<compile_context>
chip_gen: v5e
topology: v5e:2x2
jax: 0.10.0
libtpu: 0.0.40
codegen_flags: <defaults>
</compile_context>

<pallas_src>
import jax
import jax.numpy as jnp
from jax.experimental import pallas as pl
from jax.experimental.pallas import tpu as pltpu


NEG_BIG = -1e30  # bias fill for padded classifier columns -> exp() underflows to 0


def _round_up(x, m):
    return (x + m - 1) // m * m


def _pad_to(a, shape, fill=0.0):
    pads = [(0, t - s) for s, t in zip(a.shape, shape)]
    return jnp.pad(a, pads, constant_values=fill)


def _choose_tile_b(b_pad, desired):
    """Batch tile: as large as requested, but keep >=2 grid steps when possible."""
    tb = min(desired, b_pad)
    if b_pad > 16 and tb >= b_pad:          # split so megacore (v7x) gets 2 tiles
        tb = max(16, _round_up(-(-b_pad // 2), 16))
    return _round_up(tb, 16)


def pada_kernel(x_ref, w0_ref, w1_ref, b1_ref, w2_ref, b2_ref,
                feat_ref, out_ref, sm_ref):
    # x_ref : (tile_b, C*H*W)        f32 image tile (GAP folded into w0)
    # w0_ref: (C*H*W, base_pad)      bf16 stand-in backbone projection (1/HW folded in)
    # w1_ref: (base_pad, bneck_pad)  bf16   b1_ref: (1, bneck_pad) f32
    # w2_ref: (bneck_pad, cls_pad)   bf16   b2_ref: (1, cls_pad)   f32
    x = x_ref[...].astype(jnp.bfloat16)              # in-kernel cast, VPU slack

    # --- stand-in backbone: GAP + projection, folded into one MXU matmul ----
    base_feat = jnp.dot(x, w0_ref[...], preferred_element_type=jnp.float32)

    # --- bottleneck_layer: nn.Linear(base_dim, bottleneck_dim) --------------
    feat = jnp.dot(base_feat.astype(jnp.bfloat16), w1_ref[...],
                   preferred_element_type=jnp.float32) + b1_ref[...]

    # --- classifier_layer: nn.Linear(bottleneck_dim, class_num) -------------
    logits = jnp.dot(feat.astype(jnp.bfloat16), w2_ref[...],
                     preferred_element_type=jnp.float32) + b2_ref[...]

    # --- softmax over class dim (exact f32 division; padded cols have -1e30 bias)
    m = jnp.max(logits, axis=-1, keepdims=True)
    e = jnp.exp(logits - m)
    sm = e / jnp.sum(e, axis=-1, keepdims=True)

    feat_ref[...] = feat.astype(feat_ref.dtype)      # bf16 writeback
    out_ref[...] = logits                            # f32 logits
    sm_ref[...] = sm.astype(sm_ref.dtype)            # bf16 writeback


def pada_forward(x_nchw, params, *, tile_b=512):
    """x_nchw: (B, C, H, W) float32. Returns (features, outputs, softmax_outputs)."""
    B, C, H, W = x_nchw.shape
    hw = H * W
    K = C * hw

    base_dim = params["w0"].shape[1]
    bneck = params["w1"].shape[0]        # torch (out, in) layout
    cls = params["w2"].shape[0]

    base_pad = _round_up(base_dim, 128)
    bneck_pad = _round_up(bneck, 128)
    cls_pad = _round_up(cls, 128)

    b_pad = _round_up(B, 16)
    tb = _choose_tile_b(b_pad, tile_b)
    grid = (pl.cdiv(b_pad, tb),)

    # Input stays f32 in HBM: reshape is free, tiny sublane-only batch pad,
    # bf16 cast happens inside the kernel.
    x2 = x_nchw.reshape(B, K)
    if b_pad != B:
        x2 = jnp.pad(x2, ((0, b_pad - B), (0, 0)))

    # Stand-in backbone projection, expanded over the spatial axis so the GAP
    # is folded into the first matmul: row c*HW + s == w0[c] / HW.
    w0e = jnp.repeat(params["w0"] / hw, hw, axis=0)                 # (K, base_dim)
    w0e = _pad_to(w0e, (K, base_pad)).astype(jnp.bfloat16)
    # bottleneck / classifier weights: torch (out, in) -> kernel (in, out), lane-padded.
    w1 = _pad_to(params["w1"].T, (base_pad, bneck_pad)).astype(jnp.bfloat16)
    b1 = _pad_to(params["b1"][None, :], (1, bneck_pad)).astype(jnp.float32)
    w2 = _pad_to(params["w2"].T, (bneck_pad, cls_pad)).astype(jnp.bfloat16)
    b2 = _pad_to(params["b2"][None, :], (1, cls_pad),
                 fill=NEG_BIG).astype(jnp.float32)

    flops = int(2 * b_pad * (K * base_pad
                             + base_pad * bneck_pad + bneck_pad * cls_pad))
    transcendentals = int(b_pad * cls_pad)
    bytes_accessed = int(
        b_pad * K * 4                                   # x (f32 read)
        + w0e.size * 2 + w1.size * 2 + w2.size * 2      # bf16 weights
        + b1.size * 4 + b2.size * 4
        + b_pad * bneck_pad * 2                         # feat bf16
        + b_pad * cls_pad * 4                           # logits f32
        + b_pad * cls_pad * 2)                          # softmax bf16

    feats, outs, sms = pl.pallas_call(
        pada_kernel,
        grid=grid,
        in_specs=[
            pl.BlockSpec((tb, K), lambda i: (i, 0)),                # x tile
            pl.BlockSpec((K, base_pad), lambda i: (0, 0)),          # w0 (resident)
            pl.BlockSpec((base_pad, bneck_pad), lambda i: (0, 0)),  # w1 (resident)
            pl.BlockSpec((1, bneck_pad), lambda i: (0, 0)),         # b1 (resident)
            pl.BlockSpec((bneck_pad, cls_pad), lambda i: (0, 0)),   # w2 (resident)
            pl.BlockSpec((1, cls_pad), lambda i: (0, 0)),           # b2 (resident)
        ],
        out_specs=(
            pl.BlockSpec((tb, bneck_pad), lambda i: (i, 0)),
            pl.BlockSpec((tb, cls_pad), lambda i: (i, 0)),
            pl.BlockSpec((tb, cls_pad), lambda i: (i, 0)),
        ),
        out_shape=(
            jax.ShapeDtypeStruct((b_pad, bneck_pad), jnp.bfloat16),
            jax.ShapeDtypeStruct((b_pad, cls_pad), jnp.float32),
            jax.ShapeDtypeStruct((b_pad, cls_pad), jnp.bfloat16),
        ),
        compiler_params=pltpu.CompilerParams(
            dimension_semantics=("parallel",),
            vmem_limit_bytes=32 * 1024 * 1024,
        ),
        cost_estimate=pl.CostEstimate(
            flops=flops,
            transcendentals=transcendentals,
            bytes_accessed=bytes_accessed,
        ),
    )(x2, w0e, w1, b1, w2, b2)

    # Slice away batch / lane padding; tiny post-slice cast back to f32 so the
    # returned dtypes match the PyTorch module.
    features = feats[:B, :bneck].astype(jnp.float32)
    outputs = outs[:B, :cls]
    softmax_outputs = sms[:B, :cls].astype(jnp.float32)
    return features, outputs, softmax_outputs


def init_params(key, in_channels, base_dim, bottleneck_dim, class_num):
    k0, k1, k2 = jax.random.split(key, 3)
    # stand-in backbone projection
    w0 = jax.random.normal(k0, (in_channels, base_dim), jnp.float32) * 0.02
    # bottleneck_layer: weight ~ N(0, 0.005), bias = 0.1   (PyTorch (out, in) layout)
    w1 = jax.random.normal(k1, (bottleneck_dim, base_dim), jnp.float32) * 0.005
    b1 = jnp.full((bottleneck_dim,), 0.1, jnp.float32)
    # classifier_layer: weight ~ N(0, 0.01), bias = 0.0
    w2 = jax.random.normal(k2, (class_num, bottleneck_dim), jnp.float32) * 0.01
    b2 = jnp.zeros((class_num,), jnp.float32)
    return {"w0": w0, "w1": w1, "b1": b1, "w2": w2, "b2": b2}


if __name__ == "__main__":
    key = jax.random.PRNGKey(0)
    kx, kp = jax.random.split(key)

    B, C, H, W = 2, 4, 16, 16
    base_dim, bottleneck_dim, class_num = 128, 256, 31   # module defaults: 256-d bottleneck, 31 classes

    x = jax.random.normal(kx, (B, C, H, W), jnp.float32)
    params = init_params(kp, C, base_dim, bottleneck_dim, class_num)

    feats, outs, sms = pada_forward(x, params)
    jax.block_until_ready((feats, outs, sms))

    # shape / sanity checks
    assert feats.shape == (B, bottleneck_dim)
    assert outs.shape == (B, class_num)
    assert sms.shape == (B, class_num)
    assert bool(jnp.all(jnp.isfinite(feats)))
    assert bool(jnp.all(jnp.isfinite(outs)))
    assert bool(jnp.all(jnp.isfinite(sms)))
    # softmax rows sum to 1 within the bf16 writeback quantization (<= ~2^-9)
    assert bool(jnp.allclose(jnp.sum(sms, axis=-1), 1.0, atol=5e-3))

    # pure-JAX f32 reference of the same (stand-in backbone) forward pass
    gap = jnp.mean(x.reshape(B, C, H * W), axis=-1)
    base_feat = gap @ params["w0"]
    feat_r = base_feat @ params["w1"].T + params["b1"]
    out_r = feat_r @ params["w2"].T + params["b2"]
    sm_r = jax.nn.softmax(out_r, axis=-1)
    assert float(jnp.max(jnp.abs(feats - feat_r))) < 1e-2
    assert float(jnp.max(jnp.abs(outs - out_r))) < 1e-2
    assert float(jnp.max(jnp.abs(sms - sm_r))) < 2e-2

    print("KERNEL_OK")
</pallas_src>

<mosaic_0001>
module attributes {stable_mosaic.version = 11 : i64} {
  func.func @pada_kernel(%arg0: i32, %arg1: memref<16x1024xf32, #tpu.memory_space<vmem>>, %arg2: memref<1024x128xbf16, #tpu.memory_space<vmem>>, %arg3: memref<128x256xbf16, #tpu.memory_space<vmem>>, %arg4: memref<1x256xf32, #tpu.memory_space<vmem>>, %arg5: memref<256x128xbf16, #tpu.memory_space<vmem>>, %arg6: memref<1x128xf32, #tpu.memory_space<vmem>>, %arg7: memref<16x256xbf16, #tpu.memory_space<vmem>>, %arg8: memref<16x128xf32, #tpu.memory_space<vmem>>, %arg9: memref<16x128xbf16, #tpu.memory_space<vmem>>) attributes {dimension_semantics = [#tpu.dimension_semantics<parallel>], iteration_bounds = array<i64: 1>, scalar_prefetch = 0 : i64, scratch_operands = 0 : i64, tpu.core_type = #tpu.core_type<tc>, window_params = [{transform_indices = @transform_0, window_bounds = array<i64: 16, 1024>}, {pipeline_mode = #tpu.pipeline_mode<synchronous>, transform_indices = @transform_1, window_bounds = array<i64: 1024, 128>}, {pipeline_mode = #tpu.pipeline_mode<synchronous>, transform_indices = @transform_2, window_bounds = array<i64: 128, 256>}, {pipeline_mode = #tpu.pipeline_mode<synchronous>, transform_indices = @transform_3, window_bounds = array<i64: 1, 256>}, {pipeline_mode = #tpu.pipeline_mode<synchronous>, transform_indices = @transform_4, window_bounds = array<i64: 256, 128>}, {pipeline_mode = #tpu.pipeline_mode<synchronous>, transform_indices = @transform_5, window_bounds = array<i64: 1, 128>}, {transform_indices = @transform_6, window_bounds = array<i64: 16, 256>}, {transform_indices = @transform_7, window_bounds = array<i64: 16, 128>}, {transform_indices = @transform_8, window_bounds = array<i64: 16, 128>}]} {
    %c0 = arith.constant 0 : index
    %c0_0 = arith.constant 0 : index
    %0 = vector.load %arg1[%c0, %c0_0] : memref<16x1024xf32, #tpu.memory_space<vmem>>, vector<16x1024xf32>
    %1 = arith.truncf %0 : vector<16x1024xf32> to vector<16x1024xbf16>
    %c0_1 = arith.constant 0 : index
    %c0_2 = arith.constant 0 : index
    %2 = vector.load %arg2[%c0_1, %c0_2] : memref<1024x128xbf16, #tpu.memory_space<vmem>>, vector<1024x128xbf16>
    %cst = arith.constant dense<0.000000e+00> : vector<16x128xf32>
    %3 = tpu.matmul %1, %2, %cst {dimension_numbers = #tpu.dot_dimension_numbers<[1], [0], [0], [1], [0, 0, 1, 1], [], []>} : vector<16x1024xbf16>, vector<1024x128xbf16>, vector<16x128xf32> -> vector<16x128xf32>
    %4 = arith.truncf %3 : vector<16x128xf32> to vector<16x128xbf16>
    %c0_3 = arith.constant 0 : index
    %c0_4 = arith.constant 0 : index
    %5 = vector.load %arg3[%c0_3, %c0_4] : memref<128x256xbf16, #tpu.memory_space<vmem>>, vector<128x256xbf16>
    %cst_5 = arith.constant dense<0.000000e+00> : vector<16x256xf32>
    %6 = tpu.matmul %4, %5, %cst_5 {dimension_numbers = #tpu.dot_dimension_numbers<[1], [0], [0], [1], [0, 0, 1, 1], [], []>} : vector<16x128xbf16>, vector<128x256xbf16>, vector<16x256xf32> -> vector<16x256xf32>
    %c0_6 = arith.constant 0 : index
    %c0_7 = arith.constant 0 : index
    %7 = vector.load %arg4[%c0_6, %c0_7] : memref<1x256xf32, #tpu.memory_space<vmem>>, vector<1x256xf32>
    %8 = vector.broadcast %7 : vector<1x256xf32> to vector<16x256xf32>
    %9 = arith.addf %6, %8 : vector<16x256xf32>
    %10 = arith.truncf %9 : vector<16x256xf32> to vector<16x256xbf16>
    %c0_8 = arith.constant 0 : index
    %c0_9 = arith.constant 0 : index
    %11 = vector.load %arg5[%c0_8, %c0_9] : memref<256x128xbf16, #tpu.memory_space<vmem>>, vector<256x128xbf16>
    %cst_10 = arith.constant dense<0.000000e+00> : vector<16x128xf32>
    %12 = tpu.matmul %10, %11, %cst_10 {dimension_numbers = #tpu.dot_dimension_numbers<[1], [0], [0], [1], [0, 0, 1, 1], [], []>} : vector<16x256xbf16>, vector<256x128xbf16>, vector<16x128xf32> -> vector<16x128xf32>
    %c0_11 = arith.constant 0 : index
    %c0_12 = arith.constant 0 : index
    %13 = vector.load %arg6[%c0_11, %c0_12] : memref<1x128xf32, #tpu.memory_space<vmem>>, vector<1x128xf32>
    %14 = vector.broadcast %13 : vector<1x128xf32> to vector<16x128xf32>
    %15 = arith.addf %12, %14 : vector<16x128xf32>
    %cst_13 = arith.constant dense<0xFF800000> : vector<16xf32>
    %16 = vector.multi_reduction <maximumf>, %15, %cst_13 [1] : vector<16x128xf32> to vector<16xf32>
    %17 = vector.shape_cast %16 : vector<16xf32> to vector<16x1xf32>
    %18 = vector.broadcast %17 : vector<16x1xf32> to vector<16x128xf32>
    %19 = arith.subf %15, %18 : vector<16x128xf32>
    %20 = math.exp %19 : vector<16x128xf32>
    %cst_14 = arith.constant dense<0.000000e+00> : vector<16xf32>
    %21 = vector.multi_reduction <add>, %20, %cst_14 [1] : vector<16x128xf32> to vector<16xf32>
    %22 = vector.shape_cast %21 : vector<16xf32> to vector<16x1xf32>
    %23 = vector.broadcast %22 : vector<16x1xf32> to vector<16x128xf32>
    %24 = arith.divf %20, %23 : vector<16x128xf32>
    %25 = arith.truncf %9 : vector<16x256xf32> to vector<16x256xbf16>
    %c0_15 = arith.constant 0 : index
    %c0_16 = arith.constant 0 : index
    %26 = vector.load %arg7[%c0_15, %c0_16] : memref<16x256xbf16, #tpu.memory_space<vmem>>, vector<16x256xbf16>
    tpu.vector_store %arg7[%c0_15, %c0_16], %25 {strides = array<i32>} : memref<16x256xbf16, #tpu.memory_space<vmem>>, vector<16x256xbf16>,
    %c0_17 = arith.constant 0 : index
    %c0_18 = arith.constant 0 : index
    %27 = vector.load %arg8[%c0_17, %c0_18] : memref<16x128xf32, #tpu.memory_space<vmem>>, vector<16x128xf32>
    tpu.vector_store %arg8[%c0_17, %c0_18], %15 {strides = array<i32>} : memref<16x128xf32, #tpu.memory_space<vmem>>, vector<16x128xf32>,
    %28 = arith.truncf %24 : vector<16x128xf32> to vector<16x128xbf16>
    %c0_19 = arith.constant 0 : index
    %c0_20 = arith.constant 0 : index
    %29 = vector.load %arg9[%c0_19, %c0_20] : memref<16x128xbf16, #tpu.memory_space<vmem>>, vector<16x128xbf16>
    tpu.vector_store %arg9[%c0_19, %c0_20], %28 {strides = array<i32>} : memref<16x128xbf16, #tpu.memory_space<vmem>>, vector<16x128xbf16>,
    return
  }
  func.func @transform_0(%arg0: i32) -> (i32, i32) {
    %c0_i32 = arith.constant 0 : i32
    %c0_i32_0 = arith.constant 0 : i32
    return %arg0, %c0_i32 : i32, i32
  }
  func.func @transform_1(%arg0: i32) -> (i32, i32) {
    %c0_i32 = arith.constant 0 : i32
    %c0_i32_0 = arith.constant 0 : i32
    %c0_i32_1 = arith.constant 0 : i32
    return %c0_i32, %c0_i32_0 : i32, i32
  }
  func.func @transform_2(%arg0: i32) -> (i32, i32) {
    %c0_i32 = arith.constant 0 : i32
    %c0_i32_0 = arith.constant 0 : i32
    %c0_i32_1 = arith.constant 0 : i32
    return %c0_i32, %c0_i32_0 : i32, i32
  }
  func.func @transform_3(%arg0: i32) -> (i32, i32) {
    %c0_i32 = arith.constant 0 : i32
    %c0_i32_0 = arith.constant 0 : i32
    %c0_i32_1 = arith.constant 0 : i32
    return %c0_i32, %c0_i32_0 : i32, i32
  }
  func.func @transform_4(%arg0: i32) -> (i32, i32) {
    %c0_i32 = arith.constant 0 : i32
    %c0_i32_0 = arith.constant 0 : i32
    %c0_i32_1 = arith.constant 0 : i32
    return %c0_i32, %c0_i32_0 : i32, i32
  }
  func.func @transform_5(%arg0: i32) -> (i32, i32) {
    %c0_i32 = arith.constant 0 : i32
    %c0_i32_0 = arith.constant 0 : i32
    %c0_i32_1 = arith.constant 0 : i32
    return %c0_i32, %c0_i32_0 : i32, i32
  }
  func.func @transform_6(%arg0: i32) -> (i32, i32) {
    %c0_i32 = arith.constant 0 : i32
    %c0_i32_0 = arith.constant 0 : i32
    return %arg0, %c0_i32 : i32, i32
  }
  func.func @transform_7(%arg0: i32) -> (i32, i32) {
    %c0_i32 = arith.constant 0 : i32
    %c0_i32_0 = arith.constant 0 : i32
    return %arg0, %c0_i32 : i32, i32
  }
  func.func @transform_8(%arg0: i32) -> (i32, i32) {
    %c0_i32 = arith.constant 0 : i32
    %c0_i32_0 = arith.constant 0 : i32
    return %arg0, %c0_i32 : i32, i32
  }
}

</mosaic_0001>

<bundles_post_ra>
// kernel: tpu_custom_call.1
= control target key start
LH: loop header
LB: loop body
LE: loop exit
PB: predicated region body
PF: predicated region fallthrough
CT: control target
= control target key end

     0   :  { %14 = vsyncpa [#allocation3], 0  ;;  %s1937_s0 = inlined_call_operand.hbm [shape: f32[16,1024], index: 0, kind: input, shape index: {}]   ;;  %s1938_s1 = inlined_call_operand.hbm [shape: bf16[1024,128], index: 1, kind: input, shape index: {}]   ;;  %s1939_s2 = inlined_call_operand.hbm [shape: bf16[128,256], index: 2, kind: input, shape index: {}]   ;;  %s1940_s3 = inlined_call_operand.vmem [shape: f32[1,256], index: 3, kind: input, shape index: {}]   ;;  %s1941_s4 = inlined_call_operand.hbm [shape: bf16[256,128], index: 4, kind: input, shape index: {}]   ;;  %s1942_s5 = inlined_call_operand.vmem [shape: f32[1,128], index: 5, kind: input, shape index: {}]   ;;  %s1943_s6 = inlined_call_operand.hbm [shape: bf16[16,256], index: 6, kind: output, shape index: {0}]   ;;  %s1944_s7 = inlined_call_operand.hbm [shape: f32[16,128], index: 7, kind: output, shape index: {1}]   ;;  %s1945_s8 = inlined_call_operand.hbm [shape: bf16[16,128], index: 8, kind: output, shape index: {2}]  }
   0x1   :  { %15 = vsyncpa [#allocation6], 0 }
   0x2   :  { %16 = vsyncpa [#allocation9], 0 }
   0x3   :  { %17 = vsyncpa [#allocation4], 0  ;;  %s36_s29 = sshll.u32 %s1938_s1, 4  ;;  %s37_s29 = int_to_ptr.hbm [resolvable:$true] %s36_s29 }
   0x4   :  { %18 = vsyncpa [#allocation12], 0  ;;  %s1834_s30 = smov [#allocation5]   ;;  %s23_s12 = sshll.u32 %s1937_s0, 4  ;;  %s24_s12 = int_to_ptr.hbm [resolvable:$true] %s23_s12 }
   0x5   :  { %s38_s9 = sshll.u32 %s1834_s30, 4  ;;  %s1835_s13 = smov 64   ;;  %s39_s9 = int_to_ptr.vmem [resolvable:$true] %s38_s9 }
   0x6   :  { %s1836_s14 = smov 4   ;;  %s1837_s15 = smov [#allocation2]  }
   0x7   :  { %44 = dma.hbm_to_vmem [thread:$0]  %s37_s29, 8192, %s39_s9, [#allocation6], %s1835_s13, %s1835_s13, %s1836_s14  }
   0x8   :  { %s25_s16 = sshll.u32 %s1837_s15, 4  ;;  %s49_s18 = sshll.u32 %s1939_s2, 4  ;;  %s26_s16 = int_to_ptr.vmem [resolvable:$true] %s25_s16  ;;  %s50_s18 = int_to_ptr.hbm [resolvable:$true] %s49_s18 }
   0x9   :  { %s1838_s19 = smov 1024   ;;  %s1839_s20 = smov [#allocation7]  }
   0xa   :  { %31 = dma.hbm_to_vmem [thread:$0]  %s24_s12, 2048, %s26_s16, [#allocation3], %s1838_s19, %s1838_s19, %s1835_s13  }
   0xb   :  { %s51_s0 = sshll.u32 %s1839_s20, 4  ;;  %s1840_s21 = smov 128   ;;  %s52_s0 = int_to_ptr.vmem [resolvable:$true] %s51_s0 }
   0xc   :  { %s1841_s22 = smov 8   ;;  %s64_s25 = sshll.u32 %s1941_s4, 4  ;;  %s65_s25 = int_to_ptr.hbm [resolvable:$true] %s64_s25 }
   0xd   :  { %57 = dma.hbm_to_vmem [thread:$0]  %s50_s18, 2048, %s52_s0, [#allocation6], %s1840_s21, %s1840_s21, %s1841_s22  }
   0xe   :  { %s1842_s26 = smov [#allocation8]  }
   0xf   :  { %s66_s2 = sshll.u32 %s1842_s26, 4  ;;  %s67_s2 = int_to_ptr.vmem [resolvable:$true] %s66_s2 }
  0x10   :  { %72 = dma.hbm_to_vmem [thread:$0]  %s65_s25, 2048, %s67_s2, [#allocation9], %s1835_s13, %s1835_s13, %s1836_s14  }
  0x11   :  { %1824 = dma.done.wait [#allocation3], 2048  }
  0x12   :  { %1825 = vsyncadd [#allocation3], 4294965248 }
  0x13   :  { %1826 = dma.done.wait [#allocation6], 10240  }
  0x14   :  { %1827 = vsyncadd [#allocation6], 4294957056 }
  0x15   :  { %1828 = dma.done.wait [#allocation9], 2048  }
  0x16   :  { %1829 = vsyncadd [#allocation9], 4294965248  ;;  %v1541_v0 = vld [vmem:[#allocation5 + $0x38] sm:$0xff]  ;;  %v1540_v4 = vld [vmem:[#allocation5 + $0x30] sm:$0xff]  ;;  %s1113_s30 = sshll.u32 %s1944_s7, 4  ;;  %s1843_s9 = smov [#allocation11]   ;;  %s1114_s30 = int_to_ptr.hbm [resolvable:$true] %s1113_s30 }
  0x17   :  { %v1549_v1 = vld [vmem:[#allocation5 + $0x78] sm:$0xff]  ;;  %627 = vmatpush.bf16.msra.mxu0 %v1541_v0  ;;  %v1548_v5 = vld [vmem:[#allocation5 + $0x70] sm:$0xff]  ;;  %v1539_v8 = vld [vmem:[#allocation5 + $0x28] sm:$0xff]  ;;  %s1111_s10 = sshll.u32 %s1843_s9, 4  ;;  %s1844_s11 = smov [#allocation10]   ;;  %s1112_s10 = int_to_ptr.vmem [resolvable:$true] %s1111_s10 }
  0x18   :  { %v1557_v2 = vld [vmem:[#allocation5 + $0xb8] sm:$0xff]  ;;  %641 = vmatpush.bf16.msra.mxu1 %v1549_v1  ;;  %v1556_v6 = vld [vmem:[#allocation5 + $0xb0] sm:$0xff]  ;;  %v1547_v9 = vld [vmem:[#allocation5 + $0x68] sm:$0xff]  ;;  %s1098_s12 = sshll.u32 %s1844_s11, 4  ;;  %s1100_s1 = sshll.u32 %s1943_s6, 4  ;;  %s1099_s12 = int_to_ptr.vmem [resolvable:$true] %s1098_s12  ;;  %s1101_s1 = int_to_ptr.hbm [resolvable:$true] %s1100_s1 }
  0x19   :  { %v1565_v3 = vld [vmem:[#allocation5 + $0xf8] sm:$0xff]  ;;  %655 = vmatpush.bf16.msra.mxu2 %v1557_v2  ;;  %v1564_v7 = vld [vmem:[#allocation5 + $0xf0] sm:$0xff]  ;;  %v1555_v10 = vld [vmem:[#allocation5 + $0xa8] sm:$0xff]  ;;  %s1845_s6 = smov [#allocation13]   ;;  %s1126_s19 = sshll.u32 %s1945_s8, 4  ;;  %s1127_s19 = int_to_ptr.hbm [resolvable:$true] %s1126_s19 }
  0x1a   :  { %669 = vmatpush.bf16.msra.mxu3 %v1565_v3  ;;  %v1563_v11 = vld [vmem:[#allocation5 + $0xe8] sm:$0xff]  ;;  %v1538_v12 = vld [vmem:[#allocation5 + $0x20] sm:$0xff]  ;;  %v1537_v16 = vld [vmem:[#allocation5 + $0x18] sm:$0xff]  ;;  %s1124_s7 = sshll.u32 %s1845_s6, 4  ;;  %s1125_s7 = int_to_ptr.vmem [resolvable:$true] %s1124_s7 }
  0x1b   :  { %628 = vmatpush.bf16.msra.mxu0 %v1540_v4  ;;  %v1546_v13 = vld [vmem:[#allocation5 + $0x60] sm:$0xff]  ;;  %v1545_v17 = vld [vmem:[#allocation5 + $0x58] sm:$0xff]  ;;  %v1536_v20 = vld [vmem:[#allocation5 + $0x10] sm:$0xff] }
  0x1c   :  { %642 = vmatpush.bf16.msra.mxu1 %v1548_v5  ;;  %v1554_v14 = vld [vmem:[#allocation5 + $0xa0] sm:$0xff]  ;;  %v1553_v18 = vld [vmem:[#allocation5 + $0x98] sm:$0xff]  ;;  %v1544_v21 = vld [vmem:[#allocation5 + $0x50] sm:$0xff] }
  0x1d   :  { %656 = vmatpush.bf16.msra.mxu2 %v1556_v6  ;;  %v1562_v15 = vld [vmem:[#allocation5 + $0xe0] sm:$0xff]  ;;  %v1561_v19 = vld [vmem:[#allocation5 + $0xd8] sm:$0xff]  ;;  %v1552_v22 = vld [vmem:[#allocation5 + $0x90] sm:$0xff] }
  0x1e   :  { %670 = vmatpush.bf16.msra.mxu3 %v1564_v7  ;;  %v1560_v23 = vld [vmem:[#allocation5 + $0xd0] sm:$0xff]  ;;  %v1535_v24 = vld [vmem:[#allocation5 + $0x8] sm:$0xff]  ;;  %v1534_v28 = vld [vmem:[#allocation5] sm:$0xff] }
  0x1f   :  { %629 = vmatpush.bf16.msra.mxu0 %v1539_v8  ;;  %v1543_v25 = vld [vmem:[#allocation5 + $0x48] sm:$0xff]  ;;  %v1542_v29 = vld [vmem:[#allocation5 + $0x40] sm:$0xff]  ;;  %v1573_v32 = vld [vmem:[#allocation5 + $0x138] sm:$0xff] }
  0x20   :  { %643 = vmatpush.bf16.msra.mxu1 %v1547_v9  ;;  %v1551_v26 = vld [vmem:[#allocation5 + $0x88] sm:$0xff]  ;;  %v1550_v30 = vld [vmem:[#allocation5 + $0x80] sm:$0xff]  ;;  %v1581_v33 = vld [vmem:[#allocation5 + $0x178] sm:$0xff] }
  0x21   :  { %657 = vmatpush.bf16.msra.mxu2 %v1555_v10  ;;  %v1559_v27 = vld [vmem:[#allocation5 + $0xc8] sm:$0xff]  ;;  %v1558_v31 = vld [vmem:[#allocation5 + $0xc0] sm:$0xff]  ;;  %v93_v34 = vld [vmem:[#allocation2 + $0x10] sm:$0xff] }
  0x22   :  { %671 = vmatpush.bf16.msra.mxu3 %v1563_v11  ;;  %v101_v35 = vld [vmem:[#allocation2 + $0x50] sm:$0xff]  ;;  %v94_v36 = vld [vmem:[#allocation2 + $0x18] sm:$0xff]  ;;  %v91_v38 = vld [vmem:[#allocation2] sm:$0xff] }
  0x23   :  { %630 = vmatpush.bf16.msra.mxu0 %v1538_v12  ;;  %v102_v37 = vld [vmem:[#allocation2 + $0x58] sm:$0xff]  ;;  %v99_v39 = vld [vmem:[#allocation2 + $0x40] sm:$0xff]  ;;  %v92_v40 = vld [vmem:[#allocation2 + $0x8] sm:$0xff]  ;;  %v109_v44 = vpack.c.bf16 %v101_v35, %v93_v34 }
  0x24   :  { %644 = vmatpush.bf16.msra.mxu1 %v1546_v13  ;;  %v100_v41 = vld [vmem:[#allocation2 + $0x48] sm:$0xff]  ;;  %v1589_v42 = vld [vmem:[#allocation5 + $0x1b8] sm:$0xff]  ;;  %v110_v45 = vpack.c.bf16 %v102_v37, %v94_v36  ;;  %v107_v46 = vpack.c.bf16 %v99_v39, %v91_v38  ;;  %v1572_v48 = vld [vmem:[#allocation5 + $0x130] sm:$0xff] }
  0x25   :  { %658 = vmatpush.bf16.msra.mxu2 %v1554_v14  ;;  %v1597_v43 = vld [vmem:[#allocation5 + $0x1f8] sm:$0xff]  ;;  %v108_v47 = vpack.c.bf16 %v100_v41, %v92_v40  ;;  %v1580_v49 = vld [vmem:[#allocation5 + $0x170] sm:$0xff]  ;;  %v1571_v52 = vld [vmem:[#allocation5 + $0x128] sm:$0xff] }
  0x26   :  { %672 = vmatpush.bf16.msra.mxu3 %v1562_v15  ;;  %v1588_v50 = vld [vmem:[#allocation5 + $0x1b0] sm:$0xff]  ;;  %v1579_v53 = vld [vmem:[#allocation5 + $0x168] sm:$0xff]  ;;  %v1570_v56 = vld [vmem:[#allocation5 + $0x120] sm:$0xff] }
  0x27   :  { %631 = vmatpush.bf16.msra.mxu0 %v1537_v16  ;;  %v1596_v51 = vld [vmem:[#allocation5 + $0x1f0] sm:$0xff]  ;;  %v1587_v54 = vld [vmem:[#allocation5 + $0x1a8] sm:$0xff]  ;;  %v1578_v57 = vld [vmem:[#allocation5 + $0x160] sm:$0xff] }
  0x28   :  { %645 = vmatpush.bf16.msra.mxu1 %v1545_v17  ;;  %v1595_v55 = vld [vmem:[#allocation5 + $0x1e8] sm:$0xff]  ;;  %v1586_v58 = vld [vmem:[#allocation5 + $0x1a0] sm:$0xff]  ;;  %v1569_v60 = vld [vmem:[#allocation5 + $0x118] sm:$0xff] }
  0x29   :  { %659 = vmatpush.bf16.msra.mxu2 %v1553_v18  ;;  %v1594_v59 = vld [vmem:[#allocation5 + $0x1e0] sm:$0xff]  ;;  %v1577_v61 = vld [vmem:[#allocation5 + $0x158] sm:$0xff]  ;;  %v1568_v0 = vld [vmem:[#allocation5 + $0x110] sm:$0xff] }
  0x2a   :  { %673 = vmatpush.bf16.msra.mxu3 %v1561_v19  ;;  %v1585_v62 = vld [vmem:[#allocation5 + $0x198] sm:$0xff]  ;;  %v1576_v1 = vld [vmem:[#allocation5 + $0x150] sm:$0xff]  ;;  %v1567_v4 = vld [vmem:[#allocation5 + $0x108] sm:$0xff] }
  0x2b   :  { %632 = vmatpush.bf16.msra.mxu0 %v1536_v20  ;;  %v1593_v63 = vld [vmem:[#allocation5 + $0x1d8] sm:$0xff]  ;;  %v1584_v2 = vld [vmem:[#allocation5 + $0x190] sm:$0xff]  ;;  %v1575_v5 = vld [vmem:[#allocation5 + $0x148] sm:$0xff] }
  0x2c   :  { %646 = vmatpush.bf16.msra.mxu1 %v1544_v21  ;;  %v1592_v3 = vld [vmem:[#allocation5 + $0x1d0] sm:$0xff]  ;;  %v1583_v6 = vld [vmem:[#allocation5 + $0x188] sm:$0xff]  ;;  %v1566_v8 = vld [vmem:[#allocation5 + $0x100] sm:$0xff] }
  0x2d   :  { %660 = vmatpush.bf16.msra.mxu2 %v1552_v22  ;;  %v1591_v7 = vld [vmem:[#allocation5 + $0x1c8] sm:$0xff]  ;;  %v1574_v9 = vld [vmem:[#allocation5 + $0x140] sm:$0xff]  ;;  %v97_v16 = vld [vmem:[#allocation2 + $0x30] sm:$0xff] }
  0x2e   :  { %674 = vmatpush.bf16.msra.mxu3 %v1560_v23  ;;  %v1582_v10 = vld [vmem:[#allocation5 + $0x180] sm:$0xff]  ;;  %v96_v14 = vld [vmem:[#allocation2 + $0x28] sm:$0xff]  ;;  %v105_v17 = vld [vmem:[#allocation2 + $0x70] sm:$0xff] }
  0x2f   :  { %633 = vmatpush.bf16.msra.mxu0 %v1535_v24  ;;  %v1590_v11 = vld [vmem:[#allocation5 + $0x1c0] sm:$0xff]  ;;  %v104_v15 = vld [vmem:[#allocation2 + $0x68] sm:$0xff]  ;;  %v98_v18 = vld [vmem:[#allocation2 + $0x38] sm:$0xff]  ;;  %v113_v22 = vpack.c.bf16 %v105_v17, %v97_v16 }
  0x30   :  { %647 = vmatpush.bf16.msra.mxu1 %v1543_v25  ;;  %v95_v12 = vld [vmem:[#allocation2 + $0x20] sm:$0xff]  ;;  %v106_v19 = vld [vmem:[#allocation2 + $0x78] sm:$0xff]  ;;  %v112_v21 = vpack.c.bf16 %v104_v15, %v96_v14  ;;  %v1464_v24 = vld [vmem:[#allocation7 + $0x70] sm:$0xf] }
  0x31   :  { %661 = vmatpush.bf16.msra.mxu2 %v1551_v26  ;;  %v103_v13 = vld [vmem:[#allocation2 + $0x60] sm:$0xff]  ;;  %v114_v23 = vpack.c.bf16 %v106_v19, %v98_v18  ;;  %v1613_v25 = vld [vmem:[#allocation7 + $0x74] sm:$0xf0]  ;;  %v1612_v26 = vld [vmem:[#allocation7 + $0x74] sm:$0xf] }
  0x32   :  { %675 = vmatpush.bf16.msra.mxu3 %v1559_v27  ;;  %v111_v20 = vpack.c.bf16 %v103_v13, %v95_v12  ;;  %v1465_v27 = vor.u32 %v1613_v25, %v1464_v24  ;;  %v1448_v36 = vld [vmem:[#allocation7 + $0x50] sm:$0xf]  ;;  %v1609_v37 = vld [vmem:[#allocation7 + $0x54] sm:$0xf0]  ;;  %v1608_v38 = vld [vmem:[#allocation7 + $0x54] sm:$0xf] }
  0x33   :  { %634 = vmatpush.bf16.msra.mxu0 %v1534_v28  ;;  %v1466_v28 = vld [vmem:[#allocation7 + $0x78] sm:$0xf0]  ;;  %v1449_v40 = vor.u32 %v1609_v37, %v1448_v36  ;;  %v1620_v15 = vld [vmem:[#allocation8 + $0x30] sm:$0xff]  ;;  %v1619_v18 = vld [vmem:[#allocation8 + $0x28] sm:$0xff] }
  0x34   :  { %648 = vmatpush.bf16.msra.mxu1 %v1542_v29  ;;  %v1456_v29 = vld [vmem:[#allocation7 + $0x60] sm:$0xf]  ;;  %v1450_v39 = vld [vmem:[#allocation7 + $0x58] sm:$0xf0]  ;;  %v1628_v16 = vld [vmem:[#allocation8 + $0x70] sm:$0xff] }
  0x35   :  { %662 = vmatpush.bf16.msra.mxu2 %v1550_v30  ;;  %v1611_v30 = vld [vmem:[#allocation7 + $0x64] sm:$0xf0]  ;;  %v1453_v41 = vor.u32 %v1608_v38, %v1450_v39  ;;  %v1621_v12 = vld [vmem:[#allocation8 + $0x38] sm:$0xff]  ;;  %v1618_v25 = vld [vmem:[#allocation8 + $0x20] sm:$0xff] }
  0x36   :  { %676 = vmatpush.bf16.msra.mxu3 %v1558_v31  ;;  %635 = vmatmul.bf16.vlgmr.msra.gmra.mxu0 %v107_v46  ;;  %v1469_v31 = vor.u32 %v1612_v26, %v1466_v28  ;;  %v1457_v34 = vor.u32 %v1611_v30, %v1456_v29  ;;  %v1442_v46 = vld [vmem:[#allocation7 + $0x48] sm:$0xf0]  ;;  %v1629_v13 = vld [vmem:[#allocation8 + $0x78] sm:$0xff]  ;;  %v1626_v26 = vld [vmem:[#allocation8 + $0x60] sm:$0xff] }
  0x37   :  { %683 = vmatpush.bf16.msrb.mxu0 %v1573_v32  ;;  %649 = vmatmul.bf16.vlgmr.msra.gmra.mxu1 %v108_v47  ;;  %v1610_v32 = vld [vmem:[#allocation7 + $0x64] sm:$0xf]  ;;  %v1627_v19 = vld [vmem:[#allocation8 + $0x68] sm:$0xff] }
  0x38   :  { %697 = vmatpush.bf16.msrb.mxu1 %v1581_v33  ;;  %663 = vmatmul.bf16.vlgmr.msra.gmra.mxu2 %v109_v44  ;;  %v1458_v33 = vld [vmem:[#allocation7 + $0x68] sm:$0xf0]  ;;  %v1606_v44 = vld [vmem:[#allocation7 + $0x44] sm:$0xf] }
  0x39   :  { %711 = vmatpush.bf16.msrb.mxu2 %v1589_v42  ;;  %677 = vmatmul.bf16.vlgmr.msra.gmra.mxu3 %v110_v45  ;;  %v1461_v35 = vor.u32 %v1610_v32, %v1458_v33  ;;  %v1440_v42 = vld [vmem:[#allocation7 + $0x40] sm:$0xf]  ;;  %v1445_v47 = vor.u32 %v1606_v44, %v1442_v46 }
  0x3a   :  { %725 = vmatpush.bf16.msrb.mxu3 %v1597_v43  ;;  %v1607_v43 = vld [vmem:[#allocation7 + $0x44] sm:$0xf0] }
  0x3b   :  { %684 = vmatpush.bf16.msrb.mxu0 %v1572_v48  ;;  %v1441_v45 = vor.u32 %v1607_v43, %v1440_v42  ;;  %v1432_v48 = vld [vmem:[#allocation7 + $0x30] sm:$0xf] }
  0x3c   :  { %698 = vmatpush.bf16.msrb.mxu1 %v1580_v49  ;;  %v1605_v49 = vld [vmem:[#allocation7 + $0x34] sm:$0xf0] }
  0x3d   :  { %712 = vmatpush.bf16.msrb.mxu2 %v1588_v50  ;;  %v1604_v50 = vld [vmem:[#allocation7 + $0x34] sm:$0xf] }
  0x3e   :  { %726 = vmatpush.bf16.msrb.mxu3 %v1596_v51  ;;  %v1433_v51 = vor.u32 %v1605_v49, %v1432_v48  ;;  %v1625_v48 = vld [vmem:[#allocation8 + $0x58] sm:$0xff]  ;;  %v1616_v49 = vld [vmem:[#allocation8 + $0x10] sm:$0xff] }
  0x3f   :  { %685 = vmatpush.bf16.msrb.mxu0 %v1571_v52  ;;  %v1434_v52 = vld [vmem:[#allocation7 + $0x38] sm:$0xf0] }
  0x40   :  { %699 = vmatpush.bf16.msrb.mxu1 %v1579_v53  ;;  %v1437_v53 = vor.u32 %v1604_v50, %v1434_v52  ;;  %v1624_v50 = vld [vmem:[#allocation8 + $0x50] sm:$0xff]  ;;  %v1623_v52 = vld [vmem:[#allocation8 + $0x48] sm:$0xff] }
  0x41   :  { %713 = vmatpush.bf16.msrb.mxu2 %v1587_v54  ;;  %v1424_v54 = vld [vmem:[#allocation7 + $0x20] sm:$0xf] }
  0x42   :  { %727 = vmatpush.bf16.msrb.mxu3 %v1595_v55  ;;  %v1603_v55 = vld [vmem:[#allocation7 + $0x24] sm:$0xf0] }
  0x43   :  { %686 = vmatpush.bf16.msrb.mxu0 %v1570_v56  ;;  %v1602_v56 = vld [vmem:[#allocation7 + $0x24] sm:$0xf] }
  0x44   :  { %700 = vmatpush.bf16.msrb.mxu1 %v1578_v57  ;;  %v1425_v57 = vor.u32 %v1603_v55, %v1424_v54  ;;  %v1622_v54 = vld [vmem:[#allocation8 + $0x40] sm:$0xff] }
  0x45   :  { %714 = vmatpush.bf16.msrb.mxu2 %v1586_v58  ;;  %v1426_v58 = vld [vmem:[#allocation7 + $0x28] sm:$0xf0]  ;;  %v756_v55 = vld [vmem:[%s1940_s3] sm:$0x3] }
  0x46   :  { %728 = vmatpush.bf16.msrb.mxu3 %v1594_v59  ;;  %v1429_v59 = vor.u32 %v1602_v56, %v1426_v58  ;;  %v758_v56 = vperm.slane %v756_v55, 0 }
  0x47   :  { %687 = vmatpush.bf16.msrb.mxu0 %v1569_v60  ;;  %v1416_v60 = vld [vmem:[#allocation7 + $0x10] sm:$0xf] }
  0x48   :  { %701 = vmatpush.bf16.msrb.mxu1 %v1577_v61  ;;  %v1601_v61 = vld [vmem:[#allocation7 + $0x14] sm:$0xf0] }
  0x49   :  { %715 = vmatpush.bf16.msrb.mxu2 %v1585_v62  ;;  %v1600_v62 = vld [vmem:[#allocation7 + $0x14] sm:$0xf] }
  0x4a   :  { %729 = vmatpush.bf16.msrb.mxu3 %v1593_v63  ;;  %v1417_v63 = vor.u32 %v1601_v61, %v1416_v60 }
  0x4b   :  { %688 = vmatpush.bf16.msrb.mxu0 %v1568_v0  ;;  %v1418_v0 = vld [vmem:[#allocation7 + $0x18] sm:$0xf0] }
  0x4c   :  { %702 = vmatpush.bf16.msrb.mxu1 %v1576_v1 }
  0x4d   :  { %716 = vmatpush.bf16.msrb.mxu2 %v1584_v2  ;;  %v1421_v2 = vor.u32 %v1600_v62, %v1418_v0 }
  0x4e   :  { %730 = vmatpush.bf16.msrb.mxu3 %v1592_v3  ;;  %v1408_v3 = vld [vmem:[#allocation7] sm:$0xf] }
  0x4f   :  { %689 = vmatpush.bf16.msrb.mxu0 %v1567_v4  ;;  %v1599_v4 = vld [vmem:[#allocation7 + $0x4] sm:$0xf0] }
  0x50   :  { %703 = vmatpush.bf16.msrb.mxu1 %v1575_v5  ;;  %v1598_v5 = vld [vmem:[#allocation7 + $0x4] sm:$0xf] }
  0x51   :  { %717 = vmatpush.bf16.msrb.mxu2 %v1583_v6 }
  0x52   :  { %731 = vmatpush.bf16.msrb.mxu3 %v1591_v7  ;;  %v1409_v7 = vor.u32 %v1599_v4, %v1408_v3 }
  0x53   :  { %690 = vmatpush.bf16.msrb.mxu0 %v1566_v8  ;;  %v1410_v8 = vld [vmem:[#allocation7 + $0x8] sm:$0xf0] }
  0x54   :  { %704 = vmatpush.bf16.msrb.mxu1 %v1574_v9  ;;  %v1413_v9 = vor.u32 %v1598_v5, %v1410_v8 }
  0x55   :  { %718 = vmatpush.bf16.msrb.mxu2 %v1582_v10 }
  0x56   :  { %732 = vmatpush.bf16.msrb.mxu3 %v1590_v11  ;;  %691 = vmatmul.bf16.vlgmr.msrb.gmra.mxu0 %v111_v20 }
  0x57   :  { %705 = vmatmul.bf16.vlgmr.msrb.gmra.mxu1 %v112_v21  ;;  %842 = vmatpush.bf16.msra.mxu0 %v1465_v27 }
  0x58   :  { %719 = vmatmul.bf16.vlgmr.msrb.gmra.mxu2 %v113_v22  ;;  %856 = vmatpush.bf16.msra.mxu1 %v1469_v31 }
  0x59   :  { %733 = vmatmul.bf16.vlgmr.msrb.gmra.mxu3 %v114_v23  ;;  %1014 = vmatpush.bf16.msra.mxu2 %v1621_v12 }
  0x5a   :  { %1028 = vmatpush.bf16.msra.mxu3 %v1629_v13 }
  0x5b   :  { %843 = vmatpush.bf16.msra.mxu0 %v1457_v34 }
  0x5c   :  { %857 = vmatpush.bf16.msra.mxu1 %v1461_v35 }
  0x5d   :  { %1015 = vmatpush.bf16.msra.mxu2 %v1620_v15 }
  0x5e   :  { %1029 = vmatpush.bf16.msra.mxu3 %v1628_v16 }
  0x5f   :  { %844 = vmatpush.bf16.msra.mxu0 %v1449_v40 }
  0x60   :  { %858 = vmatpush.bf16.msra.mxu1 %v1453_v41 }
  0x61   :  { %1016 = vmatpush.bf16.msra.mxu2 %v1619_v18 }
  0x62   :  { %1030 = vmatpush.bf16.msra.mxu3 %v1627_v19 }
  0x63   :  { %845 = vmatpush.bf16.msra.mxu0 %v1441_v45 }
  0x64   :  { %859 = vmatpush.bf16.msra.mxu1 %v1445_v47  ;;  %v1617_v47 = vld [vmem:[#allocation8 + $0x18] sm:$0xff] }
  0x65   :  { %1017 = vmatpush.bf16.msra.mxu2 %v1618_v25 }
  0x66   :  { %1031 = vmatpush.bf16.msra.mxu3 %v1626_v26 }
  0x67   :  { %846 = vmatpush.bf16.msra.mxu0 %v1433_v51  ;;  %v1615_v51 = vld [vmem:[#allocation8 + $0x8] sm:$0xff] }
  0x68   :  { %860 = vmatpush.bf16.msra.mxu1 %v1437_v53  ;;  %v1614_v53 = vld [vmem:[#allocation8] sm:$0xff] }
  0x69   :  { %1018 = vmatpush.bf16.msra.mxu2 %v1617_v47 }
  0x6a   :  { %1032 = vmatpush.bf16.msra.mxu3 %v1625_v48 }
  0x6b   :  { %847 = vmatpush.bf16.msra.mxu0 %v1425_v57  ;;  %v759_v57 = vperm.slane %v756_v55, 1 }
  0x6c   :  { %861 = vmatpush.bf16.msra.mxu1 %v1429_v59 }
  0x6d   :  { %1019 = vmatpush.bf16.msra.mxu2 %v1616_v49 }
  0x6e   :  { %1033 = vmatpush.bf16.msra.mxu3 %v1624_v50 }
  0x6f   :  { %848 = vmatpush.bf16.msra.mxu0 %v1417_v63 }
  0x70   :  { %862 = vmatpush.bf16.msra.mxu1 %v1421_v2 }
  0x71   :  { %1020 = vmatpush.bf16.msra.mxu2 %v1615_v51 }
  0x72   :  { %1034 = vmatpush.bf16.msra.mxu3 %v1623_v52 }
  0x73   :  { %849 = vmatpush.bf16.msra.mxu0 %v1409_v7 }
  0x74   :  { %863 = vmatpush.bf16.msra.mxu1 %v1413_v9 }
  0x75   :  { %1021 = vmatpush.bf16.msra.mxu2 %v1614_v53 }
  0x76   :  { %1035 = vmatpush.bf16.msra.mxu3 %v1622_v54 }
  0xb3   :  { %v636_v1 = vpop.f32.mrf.mxu0 }
  0xb4   :  { %v650_v6 = vpop.f32.mrf.mxu1 }
  0xb5   :  { %v651_v20 = vadd.f32 %v650_v6, %v636_v1 }
  0xbb   :  { %v664_v10 = vpop.f32.mrf.mxu2  ;;  %v638_v14 = vpop.f32.mrf.mxu0 }
  0xbc   :  { %v678_v11 = vpop.f32.mrf.mxu3  ;;  %v652_v17 = vpop.f32.mrf.mxu1  ;;  %v665_v27 = vadd.f32 %v664_v10, %v651_v20  ;;  %v1647_v10 = vld [vmem:[%s1942_s5] ss:$0 sm:$0xff] }
  0xbd   :  { %v653_v23 = vadd.f32 %v652_v17, %v638_v14 }
  0xbe   :  { %v679_v30 = vadd.f32 %v678_v11, %v665_v27 }
  0xc3   :  { %v666_v21 = vpop.f32.mrf.mxu2 }
  0xc4   :  { %v680_v22 = vpop.f32.mrf.mxu3  ;;  %v667_v29 = vadd.f32 %v666_v21, %v653_v23 }
  0xc6   :  { %v681_v33 = vadd.f32 %v680_v22, %v667_v29 }
  0xd3   :  { %v692_v24 = vpop.f32.mrf.mxu0 }
  0xd4   :  { %v706_v28 = vpop.f32.mrf.mxu1  ;;  %v693_v34 = vadd.f32 %v692_v24, %v679_v30 }
  0xd6   :  { %v707_v37 = vadd.f32 %v706_v28, %v693_v34 }
  0xdb   :  { %v720_v31 = vpop.f32.mrf.mxu2  ;;  %v694_v35 = vpop.f32.mrf.mxu0 }
  0xdc   :  { %v734_v32 = vpop.f32.mrf.mxu3  ;;  %v695_v36 = vadd.f32 %v694_v35, %v681_v33  ;;  %v708_v38 = vpop.f32.mrf.mxu1  ;;  %v721_v39 = vadd.f32 %v720_v31, %v707_v37 }
  0xde   :  { %v709_v40 = vadd.f32 %v708_v38, %v695_v36  ;;  %v735_v44 = vadd.f32 %v734_v32, %v721_v39 }
  0xe3   :  { %v722_v41 = vpop.f32.mrf.mxu2 }
  0xe4   :  { %v723_v42 = vadd.f32 %v722_v41, %v709_v40  ;;  %v736_v43 = vpop.f32.mrf.mxu3 }
  0xe6   :  { %v737_v45 = vadd.f32 %v736_v43, %v723_v42 }
  0xe8   :  { %v739_v46 = vpack.c.bf16 %v737_v45, %v735_v44 }
  0xea   :  { %850 = vmatmul.bf16.vlgmr.msra.gmra.mxu0 %v739_v46  ;;  %864 = vmatmul.bf16.vlgmr.msra.gmra.mxu1 %v739_v46 }
 0x167   :  { %v851_v58 = vpop.f32.mrf.mxu0  ;;  %v865_v59 = vpop.f32.mrf.mxu1 }
 0x168   :  { %v852_v60 = vadd.f32 %v851_v58, %v758_v56  ;;  %v866_v61 = vadd.f32 %v865_v59, %v759_v57 }
 0x16a   :  { %v870_v62 = vpack.c.bf16 %v866_v61, %v852_v60 }
 0x16c   :  { %1086 = vst [vmem:[#allocation10] sm:$0xff] %v870_v62  ;;  %v910_v4 = vunpack.c.l.b16 %v870_v62  ;;  %v911_v5 = vunpack.c.h.b16 %v870_v62 }
 0x16f   :  { %v853_v63 = vpop.f32.mrf.mxu0  ;;  %v867_v0 = vpop.f32.mrf.mxu1 }
 0x170   :  { %v854_v1 = vadd.f32 %v853_v63, %v758_v56  ;;  %v868_v2 = vadd.f32 %v867_v0, %v759_v57 }
 0x172   :  { %v871_v3 = vpack.c.bf16 %v868_v2, %v854_v1 }
 0x174   :  { %v912_v6 = vunpack.c.l.b16 %v871_v3  ;;  %v913_v7 = vunpack.c.h.b16 %v871_v3  ;;  %1087 = vst [vmem:[#allocation10 + $0x8] sm:$0xff] %v871_v3 }
 0x175   :  { %1106 = dma.vmem_to_hbm [thread:$0]  %s1099_s12, 256, %s1101_s1, [#allocation4], %s1840_s21, %s1840_s21, %s1841_s22  }
 0x176   :  { %v914_v8 = vpack.c.b16 %v912_v6, %v910_v4  ;;  %v915_v9 = vpack.c.b16 %v913_v7, %v911_v5 }
 0x178   :  { %1022 = vmatmul.bf16.vlgmr.msra.gmra.mxu2 %v914_v8  ;;  %1036 = vmatmul.bf16.vlgmr.msra.gmra.mxu3 %v915_v9 }
 0x1fb   :  { %v1023_v11 = vpop.f32.mrf.mxu2  ;;  %v1037_v12 = vpop.f32.mrf.mxu3 }
 0x1fc   :  { %v1024_v13 = vadd.f32 %v1647_v10, %v1023_v11 }
 0x1fe   :  { %v1038_v14 = vadd.f32 %v1037_v12, %v1024_v13 }
 0x200   :  { %1088 = vst [vmem:[#allocation11] sm:$0xff] %v1038_v14  ;;  %1042 = vmax.xlane.f32.xlu0 %v1038_v14 }
 0x203   :  { %v1025_v15 = vpop.f32.mrf.mxu2  ;;  %v1039_v17 = vpop.f32.mrf.mxu3 }
 0x204   :  { %v1026_v16 = vadd.f32 %v1647_v10, %v1025_v15 }
 0x206   :  { %v1040_v18 = vadd.f32 %v1039_v17, %v1026_v16 }
 0x208   :  { %1089 = vst [vmem:[#allocation11 + $0x8] sm:$0xff] %v1040_v18  ;;  %1044 = vmax.xlane.f32.xlu0 %v1040_v18 }
 0x209   :  { %1119 = dma.vmem_to_hbm [thread:$0]  %s1112_s10, 256, %s1114_s30, [#allocation12], %s1840_s21, %s1840_s21, %s1841_s22  }
 0x273   :  { %v1043_v19 = vpop.xlane.xlu0 %1042 }
 0x274   :  { %v1046_v20 = vsub.f32 %v1038_v14, %v1043_v19 }
 0x276   :  { %v1048_v21 = vmul.f32 1.442695, %v1046_v20 }
 0x278   :  { %1648 = vpow2.f32 %v1048_v21 }
 0x27b   :  { %v1045_v22 = vpop.xlane.xlu0 %1044 }
 0x27c   :  { %v1047_v23 = vsub.f32 %v1040_v18, %v1045_v22 }
 0x27e   :  { %v1649_v24 = vpop.eup %1648  ;;  %v1050_v25 = vmul.f32 1.442695, %v1047_v23 }
 0x27f   :  { %1052 = vadd.xlane.f32.xlu1 %v1649_v24 }
 0x280   :  { %1650 = vpow2.f32 %v1050_v25 }
 0x286   :  { %v1651_v26 = vpop.eup %1650 }
 0x287   :  { %1054 = vadd.xlane.f32.xlu1 %v1651_v26 }
 0x2f2   :  { %v1053_v27 = vpop.xlane.xlu1 %1052 }
 0x2f3   :  { %1652 = vrcp.f32 %v1053_v27  ;;  %v1067_v36 = vand.u32 2147483648, %v1053_v27  ;;  %vm1061_vm1 = vweird.f32 %v1053_v27  ;;  %v1065_v37 = vand.u32 2147483647, %v1053_v27 }
 0x2f5   :  { %v1068_v43 = vor.u32 1.1754944e-38, %v1067_v36  ;;  %vm1066_vm4 = vcmp.eq.f32.partialorder %v1065_v37, 8.507059e+37 }
 0x2f9   :  { %v1653_v28 = vpop.eup %1652 }
 0x2fa   :  { %v1057_v29 = vmul.f32 %v1653_v28, %v1053_v27  ;;  %v1055_v30 = vpop.xlane.xlu1 %1054  ;;  %vm1062_vm0 = vweird.f32 %v1653_v28 }
 0x2fb   :  { %1654 = vrcp.f32 %v1055_v30  ;;  %vm1063_vm2 = vmor %vm1061_vm1, %vm1062_vm0  ;;  %v1082_v39 = vand.u32 2147483648, %v1055_v30  ;;  %v1080_v42 = vand.u32 2147483647, %v1055_v30  ;;  %vm1076_vm5 = vweird.f32 %v1055_v30 }
 0x2fc   :  { %v1058_v31 = vsub.f32 1.0, %v1057_v29 }
 0x2fd   :  { %v1083_v45 = vor.u32 1.1754944e-38, %v1082_v39  ;;  %vm1081_vm7 = vcmp.eq.f32.partialorder %v1080_v42, 8.507059e+37 }
 0x2fe   :  { %v1059_v32 = vmul.f32 %v1653_v28, %v1058_v31 }
 0x300   :  { %v1060_v34 = vadd.f32 %v1653_v28, %v1059_v32 }
 0x301   :  { %v1655_v33 = vpop.eup %1654 }
 0x302   :  { %v1072_v35 = vmul.f32 %v1655_v33, %v1055_v30  ;;  %v1064_v40 = vsel %vm1063_vm2, %v1653_v28, %v1060_v34  ;;  %vm1077_vm3 = vweird.f32 %v1655_v33 }
 0x303   :  { %vm1078_vm6 = vmor %vm1076_vm5, %vm1077_vm3  ;;  %v1069_v46 = vsel %vm1066_vm4, %v1068_v43, %v1064_v40 }
 0x304   :  { %v1073_v38 = vsub.f32 1.0, %v1072_v35  ;;  %v1070_v50 = vmul.f32 %v1649_v24, %v1069_v46 }
 0x306   :  { %v1074_v41 = vmul.f32 %v1655_v33, %v1073_v38 }
 0x308   :  { %v1075_v44 = vadd.f32 %v1655_v33, %v1074_v41 }
 0x30a   :  { %v1079_v47 = vsel %vm1078_vm6, %v1655_v33, %v1075_v44 }
 0x30b   :  { %v1084_v48 = vsel %vm1081_vm7, %v1083_v45, %v1079_v47 }
 0x30c   :  { %v1085_v49 = vmul.f32 %v1651_v26, %v1084_v48 }
 0x30e   :  { %v1633_v51 = vpack.c.bf16 %v1085_v49, %v1070_v50 }
 0x310   :  { %1634 = vst [vmem:[#allocation13] sm:$0xff] %v1633_v51  }
 0x311   :  { %1132 = dma.vmem_to_hbm [thread:$0]  %s1125_s7, 128, %s1127_s19, [#allocation12], %s1835_s13, %s1835_s13, %s1836_s14  }
 0x312   :  { %1830 = dma.done.wait [#allocation4], 256  }
 0x313   :  { %1831 = vsyncadd [#allocation4], 4294967040 }
 0x314   :  { %1832 = dma.done.wait [#allocation12], 384  }
 0x315   :  { %1833 = vsyncadd [#allocation12], 4294966912 }
 0x316   :  { %1145 = vsyncpa [#allocation3], 1 }
 0x317   :  { %1146 = vsyncpa [#allocation6], 1 }
 0x318   :  { %1147 = vsyncpa [#allocation9], 1 }
 0x319   :  { %1148 = vsyncpa [#allocation4], 1 }
 0x31a   :  { %1149 = vsyncpa [#allocation12], 1 }

</bundles_post_ra>
